<compile_context>
chip_gen: v6e
topology: v6e:2x2x1
jax: 0.10.0
libtpu: 0.0.40
codegen_flags: <defaults>
</compile_context>

<pallas_src>
import inspect
import math

import jax
import jax.numpy as jnp
from jax.experimental import pallas as pl
from jax.experimental.pallas import tpu as pltpu


def _round_up(x, m):
    return ((x + m - 1) // m) * m


def _cdiv(a, b):
    return -(-a // b)


try:
    _HAS_BUFFERED = (hasattr(pl, "Buffered")
                     and "pipeline_mode" in inspect.signature(pl.BlockSpec).parameters)
except (ValueError, TypeError):  # pragma: no cover - signature not introspectable
    _HAS_BUFFERED = False


def _resident_spec(shape, index_map):
    """BlockSpec for a grid-invariant operand: single-buffered when supported."""
    if _HAS_BUFFERED:
        return pl.BlockSpec(shape, index_map, pipeline_mode=pl.Buffered(1))
    return pl.BlockSpec(shape, index_map)


def _vmem_budget_bytes(frac=0.8):
    """~80% of per-core VMEM (leave headroom for Mosaic internal scratch)."""
    cap = 64 << 20  # safe fallback: v7x-sized VMEM
    try:
        info = pltpu.get_tpu_info()
        cap = int(getattr(info, "vmem_capacity_bytes", cap))
    except Exception:
        pass
    return int(frac * cap)


def _lane_pad(d):
    # Lane-dense padding. Large feature dims are padded to 256 (matches the
    # 2x256x256 MXU tile on v6e/v7x); small dims stay at 128 to limit waste.
    m = 256 if d >= 1024 else 128
    return _round_up(max(d, 1), m)


def _pad_cast_2d(a, rows, cols, dtype):
    r, c = a.shape
    if (r, c) == (rows, cols):
        return a if a.dtype == dtype else a.astype(dtype)
    out = jnp.zeros((rows, cols), dtype)
    return out.at[:r, :c].set(a.astype(dtype))


def _pad_bias(b, cols):
    b2d = b.reshape(1, -1).astype(jnp.float32)
    if b2d.shape[1] == cols:
        return b2d
    return jnp.zeros((1, cols), jnp.float32).at[:, :b2d.shape[1]].set(b2d)


# ----------------------------------------------------------------------------- kernel
def mlp_predictor_kernel(x_ref, w1_ref, b1_ref, w2_ref, b2_ref, o_ref, h_ref):
    """One (row-tile, out-column-tile) step of y = relu(x@W1 + b1)@W2 + b2.

    The hidden activation for the current row tile is computed once (first output
    column step) into the persistent VMEM scratch h_ref and reused for all W2 tiles.
    """
    @pl.when(pl.program_id(1) == 0)
    def _():
        h = jnp.dot(x_ref[...], w1_ref[...], preferred_element_type=jnp.float32)
        h = jnp.maximum(h + b1_ref[...], 0.0)           # f32 bias + ReLU
        h_ref[...] = h.astype(h_ref.dtype)

    o = jnp.dot(h_ref[...], w2_ref[...], preferred_element_type=jnp.float32)
    o_ref[...] = (o + b2_ref[...]).astype(o_ref.dtype)


# ------------------------------------------------------------------------ wrapper bits
def _prepare_weights(w1, b1, w2, b2, compute_dtype, budget):
    """Pad/cast weights once; decide whether W2 must be column-streamed."""
    in_size, hid = w1.shape
    out_size = w2.shape[1]
    in_p, hid_p, out_p = _lane_pad(in_size), _lane_pad(hid), _lane_pad(out_size)
    itemsize = jnp.dtype(compute_dtype).itemsize

    half = budget // 2
    w1_bytes = in_p * hid_p * itemsize
    tn = out_p
    if w1_bytes + hid_p * out_p * itemsize > half:
        # Stream W2 by output-column tiles so resident weights fit on v7x (64 MiB).
        # TODO(synk): if W1 alone exceeds ~half of VMEM, also stream W1 over an IN (K)
        # grid axis with a VMEM accumulator; only W2 streaming is implemented here.
        avail = max(half - w1_bytes, hid_p * 128 * itemsize)
        tn_cap = max(128, (avail // (hid_p * itemsize)) // 128 * 128)
        n_cols = _cdiv(out_p, tn_cap)
        tn = _round_up(_cdiv(out_p, n_cols), 128)
        out_p = tn * n_cols  # re-pad so tn divides out_p exactly
    n_cols = out_p // tn

    return dict(
        w1p=_pad_cast_2d(w1, in_p, hid_p, compute_dtype),
        b1p=_pad_bias(b1, hid_p),
        w2p=_pad_cast_2d(w2, hid_p, out_p, compute_dtype),
        b2p=_pad_bias(b2, out_p),
        in_size=in_size, hid=hid, out_size=out_size,
        in_p=in_p, hid_p=hid_p, out_p=out_p, tn=tn, n_cols=n_cols,
    )


def _mlp_forward(x, prep, *, compute_dtype, out_dtype, tm, budget):
    n = x.shape[0]
    in_p, hid_p, out_p = prep["in_p"], prep["hid_p"], prep["out_p"]
    tn, n_cols = prep["tn"], prep["n_cols"]
    itemsize = jnp.dtype(compute_dtype).itemsize
    out_itemsize = jnp.dtype(out_dtype).itemsize

    # Resident VMEM footprint (single-buffered when the index_map is constant).
    w1_bufs = 1 if _HAS_BUFFERED else 2
    w2_bufs = 1 if (n_cols == 1 and _HAS_BUFFERED) else 2
    resident = (w1_bufs * in_p * hid_p + w2_bufs * hid_p * tn) * itemsize \
               + w1_bufs * hid_p * 4 + w2_bufs * tn * 4

    # Per-row bytes: double-buffered x tile + double-buffered out tile + h scratch.
    per_row = 2 * in_p * itemsize + 2 * tn * out_itemsize + hid_p * itemsize

    if tm is None:
        tm_cap = (budget - resident) // max(per_row, 1)
        tm_cap = max(8, min(1024, (tm_cap // 8) * 8))
    else:
        tm_cap = max(8, (int(tm) // 8) * 8)   # user value acts as an upper bound

    # Balance row tiles (small tail padding); give the "parallel" axis >= 2 steps for
    # large batches so v7x's two TensorCores both get work.
    steps = max(1, _cdiv(n, tm_cap))
    if n >= 1024:
        steps = max(steps, 2)
    tm_rows = max(8, _round_up(_cdiv(n, steps), 8))
    n_p = _round_up(n, tm_rows)
    n_rows = n_p // tm_rows

    xp = _pad_cast_2d(x, n_p, in_p, compute_dtype)

    cost = pl.CostEstimate(
        flops=int(2 * n_p * (in_p * hid_p + hid_p * out_p)),
        transcendentals=0,
        bytes_accessed=int(n_p * in_p * itemsize
                           + (in_p * hid_p + hid_p * out_p) * itemsize
                           + (hid_p + out_p) * 4
                           + n_p * out_p * out_itemsize),
    )

    w1_spec = _resident_spec((in_p, hid_p), lambda i, j: (0, 0))
    b1_spec = _resident_spec((1, hid_p), lambda i, j: (0, 0))
    if n_cols == 1:
        w2_spec = _resident_spec((hid_p, tn), lambda i, j: (0, 0))
        b2_spec = _resident_spec((1, tn), lambda i, j: (0, 0))
    else:
        w2_spec = pl.BlockSpec((hid_p, tn), lambda i, j: (0, j))
        b2_spec = pl.BlockSpec((1, tn), lambda i, j: (0, j))

    out_padded = pl.pallas_call(
        mlp_predictor_kernel,
        out_shape=jax.ShapeDtypeStruct((n_p, out_p), out_dtype),
        grid_spec=pltpu.PrefetchScalarGridSpec(
            num_scalar_prefetch=0,
            grid=(n_rows, n_cols),
            in_specs=[
                pl.BlockSpec((tm_rows, in_p), lambda i, j: (i, 0)),   # x row tile
                w1_spec, b1_spec, w2_spec, b2_spec,
            ],
            out_specs=pl.BlockSpec((tm_rows, tn), lambda i, j: (i, j)),
            scratch_shapes=[pltpu.VMEM((tm_rows, hid_p), compute_dtype)],
        ),
        compiler_params=pltpu.CompilerParams(
            dimension_semantics=("parallel", "arbitrary"),
            vmem_limit_bytes=int(budget),
        ),
        cost_estimate=cost,
    )(xp, prep["w1p"], prep["b1p"], prep["w2p"], prep["b2p"])

    return out_padded[:n, :prep["out_size"]]


def mlp_predictor(x, w1, b1, w2, b2, *, tm=None,
                  compute_dtype=jnp.bfloat16, out_dtype=jnp.float32):
    """Fused MLP forward. x: (N, IN); w1: (IN, HID); b1: (HID,); w2: (HID, OUT);
    b2: (OUT,). Returns (N, OUT) in out_dtype."""
    budget = _vmem_budget_bytes()
    prep = _prepare_weights(w1, b1, w2, b2, compute_dtype, budget)
    return _mlp_forward(x, prep, compute_dtype=compute_dtype,
                        out_dtype=out_dtype, tm=tm, budget=budget)


def make_mlp_predictor(w1, b1, w2, b2, *, tm=None,
                       compute_dtype=jnp.bfloat16, out_dtype=jnp.float32):
    """Pad/cast the weights once (hoisted out of the per-call hot path) and return
    a forward closure taking only x."""
    budget = _vmem_budget_bytes()
    prep = _prepare_weights(w1, b1, w2, b2, compute_dtype, budget)

    def fwd(x, tm=tm):
        return _mlp_forward(x, prep, compute_dtype=compute_dtype,
                            out_dtype=out_dtype, tm=tm, budget=budget)

    return fwd


def init_linear_params(key, in_features, out_features, dtype=jnp.float32):
    """Deterministic init mimicking torch.nn.Linear.reset_parameters:
    U(-1/sqrt(fan_in), 1/sqrt(fan_in)) for both weight and bias."""
    kw, kb = jax.random.split(key)
    bound = 1.0 / math.sqrt(in_features)
    # Stored as (in_features, out_features) == W.T relative to PyTorch.
    w = jax.random.uniform(kw, (in_features, out_features),
                           minval=-bound, maxval=bound, dtype=dtype)
    b = jax.random.uniform(kb, (out_features,),
                           minval=-bound, maxval=bound, dtype=dtype)
    return w, b


if __name__ == "__main__":
    batch, input_size, hidden_size, output_size = 16, 32, 64, 16

    key = jax.random.PRNGKey(0)
    kx, k1, k2 = jax.random.split(key, 3)

    x = jax.random.normal(kx, (batch, input_size), dtype=jnp.float32)
    w1, b1 = init_linear_params(k1, input_size, hidden_size)
    w2, b2 = init_linear_params(k2, hidden_size, output_size)

    out = jax.block_until_ready(mlp_predictor(x, w1, b1, w2, b2))
    assert out.shape == (batch, output_size) and out.dtype == jnp.float32

    # f32 PyTorch-style reference (loose tolerance: bf16 MXU operands in the kernel).
    ref_f32 = jnp.maximum(x @ w1 + b1, 0.0) @ w2 + b2
    assert jnp.allclose(out, ref_f32, atol=5e-2, rtol=5e-2)

    # Matched-precision reference (tight tolerance).
    xb, w1b, w2b = (a.astype(jnp.bfloat16) for a in (x, w1, w2))
    h_ref = jnp.maximum(
        jnp.dot(xb, w1b, preferred_element_type=jnp.float32) + b1, 0.0)
    ref_m = jnp.dot(h_ref.astype(jnp.bfloat16), w2b,
                    preferred_element_type=jnp.float32) + b2
    assert jnp.allclose(out, ref_m, atol=2e-3, rtol=2e-3)

    # Prepared path (weights padded/cast once) + ragged batch with balanced row tiles:
    # tm acts as an upper bound -> 3 x 104-row tiles instead of 3 x 128 (12 dead rows).
    fwd = make_mlp_predictor(w1, b1, w2, b2)
    x2 = jax.random.normal(jax.random.PRNGKey(1), (300, input_size), dtype=jnp.float32)
    out2 = jax.block_until_ready(fwd(x2, tm=128))
    ref2 = jnp.maximum(x2 @ w1 + b1, 0.0) @ w2 + b2
    assert out2.shape == (300, output_size)
    assert jnp.allclose(out2, ref2, atol=5e-2, rtol=5e-2)

    # bf16-output option (halves writeback bytes on write-dominated shapes).
    out3 = jax.block_until_ready(
        mlp_predictor(x, w1, b1, w2, b2, out_dtype=jnp.bfloat16))
    assert out3.shape == (batch, output_size) and out3.dtype == jnp.bfloat16
    assert jnp.allclose(out3.astype(jnp.float32), ref_f32, atol=1e-1, rtol=1e-1)

    print("KERNEL_OK")
</pallas_src>

<mosaic_0001>
module attributes {stable_mosaic.version = 11 : i64} {
  func.func @mlp_predictor_kernel(%arg0: i32, %arg1: i32, %arg2: memref<16x128xbf16, #tpu.memory_space<vmem>>, %arg3: memref<128x128xbf16, #tpu.memory_space<vmem>>, %arg4: memref<1x128xf32, #tpu.memory_space<vmem>>, %arg5: memref<128x128xbf16, #tpu.memory_space<vmem>>, %arg6: memref<1x128xf32, #tpu.memory_space<vmem>>, %arg7: memref<16x128xf32, #tpu.memory_space<vmem>>, %arg8: memref<16x128xbf16, #tpu.memory_space<vmem>>) attributes {dimension_semantics = [#tpu.dimension_semantics<parallel>, #tpu.dimension_semantics<arbitrary>], iteration_bounds = array<i64: 1, 1>, scalar_prefetch = 0 : i64, scratch_operands = 1 : i64, tpu.core_type = #tpu.core_type<tc>, window_params = [{transform_indices = @transform_0, window_bounds = array<i64: 16, 128>}, {pipeline_mode = #tpu.pipeline_mode<synchronous>, transform_indices = @transform_1, window_bounds = array<i64: 128, 128>}, {pipeline_mode = #tpu.pipeline_mode<synchronous>, transform_indices = @transform_2, window_bounds = array<i64: 1, 128>}, {pipeline_mode = #tpu.pipeline_mode<synchronous>, transform_indices = @transform_3, window_bounds = array<i64: 128, 128>}, {pipeline_mode = #tpu.pipeline_mode<synchronous>, transform_indices = @transform_4, window_bounds = array<i64: 1, 128>}, {transform_indices = @transform_5, window_bounds = array<i64: 16, 128>}]} {
    %c0_i32 = arith.constant 0 : i32
    %0 = arith.cmpi eq, %arg1, %c0_i32 : i32
    %1 = arith.extui %0 : i1 to i32
    %c0_i32_0 = arith.constant 0 : i32
    %2 = arith.cmpi ne, %1, %c0_i32_0 : i32
    scf.if %2 {
      %c0_8 = arith.constant 0 : index
      %c0_9 = arith.constant 0 : index
      %10 = vector.load %arg2[%c0_8, %c0_9] : memref<16x128xbf16, #tpu.memory_space<vmem>>, vector<16x128xbf16>
      %c0_10 = arith.constant 0 : index
      %c0_11 = arith.constant 0 : index
      %11 = vector.load %arg3[%c0_10, %c0_11] : memref<128x128xbf16, #tpu.memory_space<vmem>>, vector<128x128xbf16>
      %cst_12 = arith.constant dense<0.000000e+00> : vector<16x128xf32>
      %12 = tpu.matmul %10, %11, %cst_12 {dimension_numbers = #tpu.dot_dimension_numbers<[1], [0], [0], [1], [0, 0, 1, 1], [], []>} : vector<16x128xbf16>, vector<128x128xbf16>, vector<16x128xf32> -> vector<16x128xf32>
      %c0_13 = arith.constant 0 : index
      %c0_14 = arith.constant 0 : index
      %13 = vector.load %arg4[%c0_13, %c0_14] : memref<1x128xf32, #tpu.memory_space<vmem>>, vector<1x128xf32>
      %14 = vector.broadcast %13 : vector<1x128xf32> to vector<16x128xf32>
      %15 = arith.addf %12, %14 : vector<16x128xf32>
      %cst_15 = arith.constant 0.000000e+00 : f32
      %16 = vector.broadcast %cst_15 : f32 to vector<16x128xf32>
      %17 = arith.maximumf %15, %16 : vector<16x128xf32>
      %18 = arith.truncf %17 : vector<16x128xf32> to vector<16x128xbf16>
      %c0_16 = arith.constant 0 : index
      %c0_17 = arith.constant 0 : index
      %19 = vector.load %arg8[%c0_16, %c0_17] : memref<16x128xbf16, #tpu.memory_space<vmem>>, vector<16x128xbf16>
      tpu.vector_store %arg8[%c0_16, %c0_17], %18 {strides = array<i32>} : memref<16x128xbf16, #tpu.memory_space<vmem>>, vector<16x128xbf16>,
    } else {
    }
    %c0 = arith.constant 0 : index
    %c0_1 = arith.constant 0 : index
    %3 = vector.load %arg8[%c0, %c0_1] : memref<16x128xbf16, #tpu.memory_space<vmem>>, vector<16x128xbf16>
    %c0_2 = arith.constant 0 : index
    %c0_3 = arith.constant 0 : index
    %4 = vector.load %arg5[%c0_2, %c0_3] : memref<128x128xbf16, #tpu.memory_space<vmem>>, vector<128x128xbf16>
    %cst = arith.constant dense<0.000000e+00> : vector<16x128xf32>
    %5 = tpu.matmul %3, %4, %cst {dimension_numbers = #tpu.dot_dimension_numbers<[1], [0], [0], [1], [0, 0, 1, 1], [], []>} : vector<16x128xbf16>, vector<128x128xbf16>, vector<16x128xf32> -> vector<16x128xf32>
    %c0_4 = arith.constant 0 : index
    %c0_5 = arith.constant 0 : index
    %6 = vector.load %arg6[%c0_4, %c0_5] : memref<1x128xf32, #tpu.memory_space<vmem>>, vector<1x128xf32>
    %7 = vector.broadcast %6 : vector<1x128xf32> to vector<16x128xf32>
    %8 = arith.addf %5, %7 : vector<16x128xf32>
    %c0_6 = arith.constant 0 : index
    %c0_7 = arith.constant 0 : index
    %9 = vector.load %arg7[%c0_6, %c0_7] : memref<16x128xf32, #tpu.memory_space<vmem>>, vector<16x128xf32>
    tpu.vector_store %arg7[%c0_6, %c0_7], %8 {strides = array<i32>} : memref<16x128xf32, #tpu.memory_space<vmem>>, vector<16x128xf32>,
    return
  }
  func.func @transform_0(%arg0: i32, %arg1: i32) -> (i32, i32) {
    %c0_i32 = arith.constant 0 : i32
    %c0_i32_0 = arith.constant 0 : i32
    return %arg0, %c0_i32 : i32, i32
  }
  func.func @transform_1(%arg0: i32, %arg1: i32) -> (i32, i32) {
    %c0_i32 = arith.constant 0 : i32
    %c0_i32_0 = arith.constant 0 : i32
    %c0_i32_1 = arith.constant 0 : i32
    return %c0_i32, %c0_i32_0 : i32, i32
  }
  func.func @transform_2(%arg0: i32, %arg1: i32) -> (i32, i32) {
    %c0_i32 = arith.constant 0 : i32
    %c0_i32_0 = arith.constant 0 : i32
    %c0_i32_1 = arith.constant 0 : i32
    return %c0_i32, %c0_i32_0 : i32, i32
  }
  func.func @transform_3(%arg0: i32, %arg1: i32) -> (i32, i32) {
    %c0_i32 = arith.constant 0 : i32
    %c0_i32_0 = arith.constant 0 : i32
    %c0_i32_1 = arith.constant 0 : i32
    return %c0_i32, %c0_i32_0 : i32, i32
  }
  func.func @transform_4(%arg0: i32, %arg1: i32) -> (i32, i32) {
    %c0_i32 = arith.constant 0 : i32
    %c0_i32_0 = arith.constant 0 : i32
    %c0_i32_1 = arith.constant 0 : i32
    return %c0_i32, %c0_i32_0 : i32, i32
  }
  func.func @transform_5(%arg0: i32, %arg1: i32) -> (i32, i32) {
    %c0_i32 = arith.constant 0 : i32
    return %arg0, %arg1 : i32, i32
  }
}

</mosaic_0001>

<bundles_post_ra>
// kernel: tpu_custom_call.1
= control target key start
LH: loop header
LB: loop body
LE: loop exit
PB: predicated region body
PF: predicated region fallthrough
CT: control target
= control target key end

     0   :  { %10 = vsyncpa [#allocation4], 0  ;;  %s598_s0 = inlined_call_operand.hbm [shape: bf16[16,128], index: 0, kind: input, shape index: {}]   ;;  %s599_s1 = inlined_call_operand.hbm [shape: bf16[128,128], index: 1, kind: input, shape index: {}]   ;;  %s600_s2 = inlined_call_operand.vmem [shape: f32[1,128], index: 2, kind: input, shape index: {}]   ;;  %s601_s3 = inlined_call_operand.hbm [shape: bf16[128,128], index: 3, kind: input, shape index: {}]   ;;  %s602_s4 = inlined_call_operand.vmem [shape: f32[1,128], index: 4, kind: input, shape index: {}]   ;;  %s603_s5 = inlined_call_operand.hbm [shape: f32[16,128], index: 5, kind: output, shape index: {}]  }
   0x1   :  { %11 = vsyncpa [#allocation7], 0 }
   0x2   :  { %12 = vsyncpa [#allocation5], 0  ;;  %s540_s18 = smov [#allocation6]   ;;  %s541_s20 = smov [#allocation3]  }
   0x3   :  { %s30_s19 = sshll.u32 %s540_s18, 4  ;;  %s18_s21 = sshll.u32 %s541_s20, 4  ;;  %s31_s19 = int_to_ptr.vmem [resolvable:$true] %s30_s19  ;;  %s19_s21 = int_to_ptr.vmem [resolvable:$true] %s18_s21 }
   0x4   :  { %s462_s22 = scalar_lea.vmem %s31_s19, 1024  ;;  %p467_p1 = scmp.lt.s32.totalorder %s31_s19, %s31_s19 }
   0x5   :  { %p463_p0 = scmp.ne.s32.totalorder %s31_s19, %s462_s22  ;;  %p468_p2 = scmp.lt.s32.totalorder %s462_s22, %s462_s22 }
   0x7   :  { %p469_p3 = por %p468_p2, %p467_p1 }
   0x9   :  { %p470_p4 = pnand %p469_p3, %p463_p0 }
   0xb   :  { %473 = shalt.err (!%p470_p4)
}
   0xc   :  { %s542_s23 = smov 64   ;;  %s543_s24 = smov 4  }
   0xd   :  { %36 = dma.hbm_to_vmem [thread:$0]  %s599_s1, 1024, %s31_s19, [#allocation7], %s542_s23, %s542_s23, %s543_s24  }
   0xe   :  { %s482_s27 = scalar_lea.vmem %s19_s21, 128  ;;  %p487_p6 = scmp.lt.s32.totalorder %s19_s21, %s19_s21 }
   0xf   :  { %p483_p5 = scmp.ne.s32.totalorder %s19_s21, %s482_s27  ;;  %p488_p7 = scmp.lt.s32.totalorder %s482_s27, %s482_s27 }
  0x11   :  { %p489_p8 = por %p488_p7, %p487_p6 }
  0x13   :  { %p490_p9 = pnand %p489_p8, %p483_p5 }
  0x15   :  { %493 = shalt.err (!%p490_p9)
}
  0x16   :  { %24 = dma.hbm_to_vmem [thread:$0]  %s598_s0, 128, %s19_s21, [#allocation4], %s542_s23, %s542_s23, %s543_s24  }
  0x17   :  { %s544_s30 = smov [#allocation8]  }
  0x18   :  { %s44_s6 = sshll.u32 %s544_s30, 4  ;;  %s45_s6 = int_to_ptr.vmem [resolvable:$true] %s44_s6 }
  0x19   :  { %s502_s7 = scalar_lea.vmem %s45_s6, 1024  ;;  %p507_p11 = scmp.lt.s32.totalorder %s45_s6, %s45_s6 }
  0x1a   :  { %p503_p10 = scmp.ne.s32.totalorder %s45_s6, %s502_s7  ;;  %p508_p12 = scmp.lt.s32.totalorder %s502_s7, %s502_s7 }
  0x1c   :  { %p509_p13 = por %p508_p12, %p507_p11 }
  0x1e   :  { %p510_p0 = pnand %p509_p13, %p503_p10 }
  0x20   :  { %513 = shalt.err (!%p510_p0)
}
  0x21   :  { %50 = dma.hbm_to_vmem [thread:$0]  %s601_s3, 1024, %s45_s6, [#allocation7], %s542_s23, %s542_s23, %s543_s24  }
  0x22   :  { %534 = dma.done.wait [#allocation4], 128  }
  0x23   :  { %535 = vsyncadd [#allocation4], 4294967168 }
  0x24   :  { %536 = dma.done.wait [#allocation7], 2048  }
  0x25   :  { %537 = vsyncadd [#allocation7], 4294965248  ;;  %v545_v0 = vmov 0.0   ;;  %vm546_vm0 = vmmov 0   ;;  %v436_v1 = vld [vmem:[#allocation6 + $0x38] sm:$0xff]   ;;  %v437_v2 = vld [vmem:[#allocation6 + $0x30] sm:$0xff]  }
  0x26   :  { %386 = vmatprep.subr.bf16.mxu0 %v545_v0  ;;  %402 = vmatprep.mubr.msk.bf16.mxu0 %vm546_vm0, %v545_v0  ;;  %v438_v3 = vld [vmem:[#allocation6 + $0x28] sm:$0xff]   ;;  %v445_v4 = vld [vmem:[#allocation8 + $0x38] sm:$0xff]   ;;  %v439_v5 = vld [vmem:[#allocation6 + $0x20] sm:$0xff]   ;;  %s547_s11 = smov [#allocation9]  }
  0x27   :  { %406 = vmatprep.subr.bf16.mxu1 %v545_v0  ;;  %422 = vmatprep.mubr.msk.bf16.mxu1 %vm546_vm0, %v545_v0  ;;  %v446_v6 = vld [vmem:[#allocation8 + $0x30] sm:$0xff]   ;;  %v440_v7 = vld [vmem:[#allocation6 + $0x18] sm:$0xff]   ;;  %v447_v8 = vld [vmem:[#allocation8 + $0x28] sm:$0xff]  }
  0x28   :  { %387 = vmatpush3.bf16.msra.mxu0 %v436_v1  ;;  %407 = vmatpush3.bf16.msra.mxu1 %v445_v4  ;;  %v441_v9 = vld [vmem:[#allocation6 + $0x10] sm:$0xff]   ;;  %v442_v10 = vld [vmem:[#allocation6 + $0x8] sm:$0xff]   ;;  %v443_v11 = vld [vmem:[#allocation6] sm:$0xff]  }
  0x29   :  { %388 = vmatprep.subr.bf16.mxu0 %v545_v0  ;;  %408 = vmatprep.subr.bf16.mxu1 %v545_v0  ;;  %v444_v12 = vld [vmem:[#allocation3] sm:$0xff]   ;;  %v448_v13 = vld [vmem:[#allocation8 + $0x20] sm:$0xff]   ;;  %v450_v15 = vld [vmem:[#allocation8 + $0x10] sm:$0xff]  }
  0x2a   :  { %v449_v14 = vld [vmem:[#allocation8 + $0x18] sm:$0xff]   ;;  %v451_v16 = vld [vmem:[#allocation8 + $0x8] sm:$0xff]   ;;  %v452_v17 = vld [vmem:[#allocation8] sm:$0xff]  }
  0x2b   :  { %v339_v18 = vld [vmem:[%s600_s2] ss:$0 sm:$0xff]  ;;  %s326_s2 = sshll.u32 %s547_s11, 4  ;;  %s327_s2 = int_to_ptr.vmem [resolvable:$true] %s326_s2 }
  0x2c   :  { %389 = vmatpush3.bf16.msra.mxu0 %v437_v2  ;;  %409 = vmatpush3.bf16.msra.mxu1 %v446_v6  ;;  %v351_v29 = vld [vmem:[%s602_s4] ss:$0 sm:$0xff]  ;;  %s514_s12 = scalar_lea.vmem %s327_s2, 256  ;;  %p519_p2 = scmp.lt.s32.totalorder %s327_s2, %s327_s2 }
  0x2d   :  { %390 = vmatprep.subr.bf16.mxu0 %v545_v0  ;;  %410 = vmatprep.subr.bf16.mxu1 %v545_v0  ;;  %p515_p1 = scmp.ne.s32.totalorder %s327_s2, %s514_s12  ;;  %p520_p3 = scmp.lt.s32.totalorder %s514_s12, %s514_s12 }
  0x2f   :  { %p521_p4 = por %p520_p3, %p519_p2 }
  0x30   :  { %391 = vmatpush3.bf16.msra.mxu0 %v438_v3  ;;  %411 = vmatpush3.bf16.msra.mxu1 %v447_v8 }
  0x31   :  { %392 = vmatprep.subr.bf16.mxu0 %v545_v0  ;;  %412 = vmatprep.subr.bf16.mxu1 %v545_v0  ;;  %p522_p5 = pnand %p521_p4, %p515_p1 }
  0x34   :  { %393 = vmatpush3.bf16.msra.mxu0 %v439_v5  ;;  %413 = vmatpush3.bf16.msra.mxu1 %v448_v13 }
  0x35   :  { %394 = vmatprep.subr.bf16.mxu0 %v545_v0  ;;  %414 = vmatprep.subr.bf16.mxu1 %v545_v0 }
  0x38   :  { %395 = vmatpush3.bf16.msra.mxu0 %v440_v7  ;;  %415 = vmatpush3.bf16.msra.mxu1 %v449_v14 }
  0x39   :  { %396 = vmatprep.subr.bf16.mxu0 %v545_v0  ;;  %416 = vmatprep.subr.bf16.mxu1 %v545_v0 }
  0x3c   :  { %397 = vmatpush3.bf16.msra.mxu0 %v441_v9  ;;  %417 = vmatpush3.bf16.msra.mxu1 %v450_v15 }
  0x3d   :  { %398 = vmatprep.subr.bf16.mxu0 %v545_v0  ;;  %418 = vmatprep.subr.bf16.mxu1 %v545_v0 }
  0x40   :  { %399 = vmatpush3.bf16.msra.mxu0 %v442_v10  ;;  %419 = vmatpush3.bf16.msra.mxu1 %v451_v16 }
  0x41   :  { %400 = vmatprep.subr.bf16.mxu0 %v545_v0  ;;  %420 = vmatprep.subr.bf16.mxu1 %v545_v0 }
  0x44   :  { %401 = vmatpush3.bf16.msra.mxu0 %v443_v11  ;;  %421 = vmatpush3.bf16.msra.mxu1 %v452_v17 }
  0x47   :  { %403 = vmatmul.mubr.bf16.vlgmr.msra.gmra.mxu0 %v444_v12 }
 0x107   :  { %v180_v19 = vpop.f32.mrf.mxu0 }
 0x108   :  { %v181_v21 = vadd.f32 %v339_v18, %v180_v19 }
 0x109   :  { %v404_v20 = vpop.f32.mrf.mxu0 }
 0x10a   :  { %v187_v25 = vmax.f32 %v181_v21, 0.0 }
 0x10b   :  { %v183_v22 = vpop.f32.mrf.mxu0 }
 0x10c   :  { %v184_v23 = vadd.f32 %v339_v18, %v183_v22 }
 0x10d   :  { %v405_v24 = vpop.f32.mrf.mxu0 }
 0x10e   :  { %v188_v26 = vmax.f32 %v184_v23, 0.0 }
 0x110   :  { %v366_v27 = vpack.c.bf16 %v188_v26, %v187_v25 }
 0x112   :  { %367 = vst [vmem:[#allocation2] sm:$0xff] %v366_v27  }
 0x119   :  { %v453_v28 = vld [vmem:[#allocation2] sm:$0xff]  }
 0x11a   :  { %423 = vmatmul.mubr.bf16.vlgmr.msra.gmra.mxu1 %v453_v28 }
 0x1da   :  { %v312_v30 = vpop.f32.mrf.mxu1 }
 0x1db   :  { %v313_v31 = vadd.f32 %v351_v29, %v312_v30 }
 0x1dc   :  { %v424_v32 = vpop.f32.mrf.mxu1 }
 0x1dd   :  { %319 = vst [vmem:[#allocation9] sm:$0xff] %v313_v31 }
 0x1de   :  { %v315_v33 = vpop.f32.mrf.mxu1 }
 0x1df   :  { %v316_v34 = vadd.f32 %v351_v29, %v315_v33 }
 0x1e0   :  { %v425_v35 = vpop.f32.mrf.mxu1 }
 0x1e1   :  { %320 = vst [vmem:[#allocation9 + $0x8] sm:$0xff] %v316_v34 }
 0x1e2   :  { %525 = shalt.err (!%p522_p5)
}
 0x1e3   :  { %s548_s13 = smov 128   ;;  %s549_s4 = smov 8  }
 0x1e4   :  { %332 = dma.vmem_to_hbm [thread:$0]  %s327_s2, 256, %s603_s5, [#allocation5], %s548_s13, %s548_s13, %s549_s4  }
 0x1e5   :  { %538 = dma.done.wait [#allocation5], 256  }
 0x1e6   :  { %539 = vsyncadd [#allocation5], 4294967040 }
 0x1e7   :  { %336 = vsyncpa [#allocation4], 1 }
 0x1e8   :  { %337 = vsyncpa [#allocation7], 1 }
 0x1e9   :  { %338 = vsyncpa [#allocation5], 1 }

</bundles_post_ra>
